<compile_context>
chip_gen: v7x
topology: tpu7x:2x2x1
jax: 0.10.0
libtpu: 0.0.40
codegen_flags: <defaults>
</compile_context>

<pallas_src>
import functools

import jax
import jax.numpy as jnp
from jax.experimental import pallas as pl
from jax.experimental.pallas import tpu as pltpu

LANES = 128
SUBLANES = 8


def _round_down(x, m):
    return (x // m) * m


def _row_align(dtype):
    # Rows per native sublane tile: f32 -> 8, bf16 -> 16, int8/bool -> 32.
    return max(SUBLANES, 32 // jnp.dtype(dtype).itemsize)


def _focal_loss_elementwise(x, t, alpha, gamma):
    """Per-element focal loss for f32 logits `x` and f32 targets `t`."""
    # sigmoid via a single EUP tanh (no exact f32 divide).
    prob = 0.5 * jnp.tanh(0.5 * x) + 0.5
    pt = (1.0 - prob) * t + prob * (1.0 - t)
    alpha_w = alpha * t + (1.0 - alpha) * (1.0 - t)
    if gamma == 2.0:            # static branch: avoid the exp/log pow path
        pt_pow = pt * pt
    elif gamma == 1.0:
        pt_pow = pt
    else:
        pt_pow = jnp.power(pt, jnp.float32(gamma))
    weight = pt_pow * alpha_w
    # Numerically-stable BCE-with-logits (== F.binary_cross_entropy_with_logits).
    bce = jnp.maximum(x, 0.0) - x * t + jnp.log1p(jnp.exp(-jnp.abs(x)))
    return bce * weight


def _focal_loss_kernel(x_ref, t_ref, o_ref, *, alpha, gamma, chunk_rows,
                       n_chunks):
    """Accumulates an (8, 128) partial focal-loss sum over one input block."""

    @pl.when(pl.program_id(0) == 0)
    def _init():
        o_ref[...] = jnp.zeros_like(o_ref)

    def accumulate(row_start):
        x = x_ref[pl.ds(row_start, chunk_rows), :].astype(jnp.float32)
        t = t_ref[pl.ds(row_start, chunk_rows), :].astype(jnp.float32)
        loss = _focal_loss_elementwise(x, t, alpha, gamma)
        # Fold (chunk_rows, 128) -> (8, 128) with pure VPU adds; the reshape is
        # (8,128)-tile aligned so it stays a no-copy view.
        o_ref[...] += loss.reshape(chunk_rows // SUBLANES, SUBLANES,
                                   LANES).sum(axis=0)

    if n_chunks == 1:
        accumulate(0)
    else:
        # Strip-mine the big DMA block so VMEM temporaries stay chunk-sized.
        @pl.loop(0, n_chunks)
        def _(ci):
            accumulate(pl.multiple_of(ci * chunk_rows, chunk_rows))


def focal_loss(input, target, alpha=0.25, gamma=2.0, block_rows=8192,
               chunk_rows=512):
    assert input.shape == target.shape, "input/target shape mismatch"
    alpha = float(alpha)
    gamma = float(gamma)
    block_rows = int(block_rows)
    n_elems = int(input.size)

    x_flat = input.reshape(-1)
    t_flat = target.reshape(-1)
    # torch does target.type_as(input); instead keep narrow label dtypes in HBM
    # (bool -> int8 once) and up-cast to f32 per tile inside the kernel.
    if t_flat.dtype == jnp.bool_:
        t_flat = t_flat.astype(jnp.int8)

    if n_elems == 0:
        return jnp.float32(jnp.nan)           # torch: mean of empty -> nan

    align = max(_row_align(x_flat.dtype), _row_align(t_flat.dtype))
    full_rows = n_elems // LANES              # rows fully backed by real data
    chunk_rows = max(align, _round_down(int(chunk_rows), align))

    # Pick the DMA block size: as large as possible, chunk-aligned, and never
    # larger than the data (so no boundary/padded blocks are ever visited).
    if full_rows >= chunk_rows:
        blk = max(chunk_rows,
                  _round_down(min(block_rows, full_rows), chunk_rows))
    else:
        blk = _round_down(full_rows, align)   # may be 0 for tiny inputs
        chunk_rows = max(blk, 1)
    steps = full_rows // blk if blk else 0
    coverage = steps * blk * LANES            # elements handled by the kernel

    total = jnp.float32(0.0)

    if steps > 0:
        # Lane-dense 2-D view.  Zero-copy when n_elems % 128 == 0 (contiguous
        # reshape); otherwise pad the flat tail to the next multiple of 128
        # (padded rows are never read: coverage <= full_rows * 128).
        lane_pad = (-n_elems) % LANES
        if lane_pad:
            x2 = jnp.pad(x_flat, (0, lane_pad))
            t2 = jnp.pad(t_flat, (0, lane_pad))
        else:
            x2, t2 = x_flat, t_flat
        rows_arr = (n_elems + lane_pad) // LANES
        x2 = x2.reshape(rows_arr, LANES)
        t2 = t2.reshape(rows_arr, LANES)

        kernel = functools.partial(
            _focal_loss_kernel, alpha=alpha, gamma=gamma,
            chunk_rows=chunk_rows, n_chunks=blk // chunk_rows)

        cost = pl.CostEstimate(
            flops=22 * coverage,
            transcendentals=3 * coverage,
            bytes_accessed=coverage * (x2.dtype.itemsize + t2.dtype.itemsize)
            + SUBLANES * LANES * 4,
        )

        partial = pl.pallas_call(
            kernel,
            out_shape=jax.ShapeDtypeStruct((SUBLANES, LANES), jnp.float32),
            grid_spec=pltpu.PrefetchScalarGridSpec(
                num_scalar_prefetch=0,
                grid=(steps,),
                in_specs=[
                    pl.BlockSpec((blk, LANES), lambda j: (j, 0)),
                    pl.BlockSpec((blk, LANES), lambda j: (j, 0)),
                ],
                out_specs=pl.BlockSpec((SUBLANES, LANES), lambda j: (0, 0)),
            ),
            compiler_params=pltpu.CompilerParams(
                dimension_semantics=("arbitrary",),
                vmem_limit_bytes=48 * 1024 * 1024,
            ),
            cost_estimate=cost,
        )(x2, t2)
        total = jnp.sum(partial, dtype=jnp.float32)

    # Remainder (< block_rows*128 elements): plain JAX, folded into the mean.
    if coverage < n_elems:
        x_rem = x_flat[coverage:].astype(jnp.float32)
        t_rem = t_flat[coverage:].astype(jnp.float32)
        total = total + jnp.sum(
            _focal_loss_elementwise(x_rem, t_rem, alpha, gamma),
            dtype=jnp.float32)

    return total / n_elems


class FocalLoss:
    """JAX/Pallas port of ltr.models.loss.losses.FocalLoss (forward only)."""

    def __init__(self, alpha=0.25, gamma=2.0):
        self.alpha = alpha
        self.gamma = gamma

    def __call__(self, input, target):
        return focal_loss(input, target, alpha=self.alpha, gamma=self.gamma)


def _focal_loss_ref(x, y, alpha=0.25, gamma=2.0):
    y = y.astype(x.dtype)
    prob = jax.nn.sigmoid(x)
    pt = (1.0 - prob) * y + prob * (1.0 - y)
    weight = pt ** gamma * (alpha * y + (1.0 - alpha) * (1.0 - y))
    bce = jnp.maximum(x, 0.0) - x * y + jnp.log1p(jnp.exp(-jnp.abs(x)))
    return jnp.mean(bce * weight)


if __name__ == "__main__":
    key = jax.random.PRNGKey(0)
    k = jax.random.split(key, 6)
    loss_mod = FocalLoss(alpha=0.25, gamma=2.0)

    # 1) NCHW logits with float targets (single grid step, single chunk).
    x1 = jax.random.normal(k[0], (2, 4, 16, 16), dtype=jnp.float32)
    y1 = jax.random.bernoulli(k[1], 0.5, (2, 4, 16, 16)).astype(jnp.float32)
    out1 = jax.block_until_ready(loss_mod(x1, y1))
    ref1 = _focal_loss_ref(x1, y1)
    assert jnp.allclose(out1, ref1, rtol=1e-4, atol=1e-6), (out1, ref1)

    # 2) Tiny ragged size (not a multiple of 128) with boolean labels:
    #    exercised entirely by the plain-JAX remainder path of the wrapper.
    x2 = jax.random.normal(k[2], (3, 5, 41), dtype=jnp.float32)
    y2 = jax.random.bernoulli(k[3], 0.3, (3, 5, 41))            # bool labels
    out2 = jax.block_until_ready(loss_mod(x2, y2))
    ref2 = _focal_loss_ref(x2, y2)
    assert jnp.allclose(out2, ref2, rtol=1e-4, atol=1e-6), (out2, ref2)

    # 3) Larger map with int8 labels: exercises multi-step grid accumulation,
    #    the in-block chunk loop and the narrow-dtype target path.
    x3 = jax.random.normal(k[4], (8, 8, 64, 64), dtype=jnp.float32)
    y3 = jax.random.bernoulli(k[5], 0.5, (8, 8, 64, 64)).astype(jnp.int8)
    out3 = jax.block_until_ready(focal_loss(x3, y3, block_rows=1024))
    ref3 = _focal_loss_ref(x3, y3)
    assert jnp.allclose(out3, ref3, rtol=1e-4, atol=1e-6), (out3, ref3)

    print("KERNEL_OK")
</pallas_src>

<mosaic_0001>
module attributes {stable_mosaic.version = 11 : i64} {
  func.func @_focal_loss_kernel(%arg0: i32, %arg1: memref<16x128xf32, #tpu.memory_space<vmem>>, %arg2: memref<16x128xf32, #tpu.memory_space<vmem>>, %arg3: memref<8x128xf32, #tpu.memory_space<vmem>>) attributes {dimension_semantics = [#tpu.dimension_semantics<arbitrary>], iteration_bounds = array<i64: 1>, scalar_prefetch = 0 : i64, scratch_operands = 0 : i64, tpu.core_type = #tpu.core_type<tc>, window_params = [{transform_indices = @transform_0, window_bounds = array<i64: 16, 128>}, {transform_indices = @transform_1, window_bounds = array<i64: 16, 128>}, {pipeline_mode = #tpu.pipeline_mode<synchronous>, transform_indices = @transform_2, window_bounds = array<i64: 8, 128>}]} {
    %c0_i32 = arith.constant 0 : i32
    %0 = arith.cmpi eq, %arg0, %c0_i32 : i32
    %1 = arith.extui %0 : i1 to i32
    %c0_i32_0 = arith.constant 0 : i32
    %2 = arith.cmpi ne, %1, %c0_i32_0 : i32
    scf.if %2 {
      %cst_18 = arith.constant 0.000000e+00 : f32
      %44 = vector.broadcast %cst_18 : f32 to vector<8x128xf32>
      %c0_19 = arith.constant 0 : index
      %c0_20 = arith.constant 0 : index
      %45 = vector.load %arg3[%c0_19, %c0_20] : memref<8x128xf32, #tpu.memory_space<vmem>>, vector<8x128xf32>
      tpu.vector_store %arg3[%c0_19, %c0_20], %44 {strides = array<i32>} : memref<8x128xf32, #tpu.memory_space<vmem>>, vector<8x128xf32>,
    } else {
    }
    %c0 = arith.constant 0 : index
    %c0_1 = arith.constant 0 : index
    %3 = vector.load %arg1[%c0, %c0_1] : memref<16x128xf32, #tpu.memory_space<vmem>>, vector<16x128xf32>
    %c0_2 = arith.constant 0 : index
    %c0_3 = arith.constant 0 : index
    %4 = vector.load %arg2[%c0_2, %c0_3] : memref<16x128xf32, #tpu.memory_space<vmem>>, vector<16x128xf32>
    %cst = arith.constant 5.000000e-01 : f32
    %5 = vector.broadcast %cst : f32 to vector<16x128xf32>
    %6 = arith.mulf %5, %3 : vector<16x128xf32>
    %7 = math.tanh %6 : vector<16x128xf32>
    %cst_4 = arith.constant 5.000000e-01 : f32
    %8 = vector.broadcast %cst_4 : f32 to vector<16x128xf32>
    %9 = arith.mulf %8, %7 : vector<16x128xf32>
    %cst_5 = arith.constant 5.000000e-01 : f32
    %10 = vector.broadcast %cst_5 : f32 to vector<16x128xf32>
    %11 = arith.addf %9, %10 : vector<16x128xf32>
    %cst_6 = arith.constant 1.000000e+00 : f32
    %12 = vector.broadcast %cst_6 : f32 to vector<16x128xf32>
    %13 = arith.subf %12, %11 : vector<16x128xf32>
    %14 = arith.mulf %13, %4 : vector<16x128xf32>
    %cst_7 = arith.constant 1.000000e+00 : f32
    %15 = vector.broadcast %cst_7 : f32 to vector<16x128xf32>
    %16 = arith.subf %15, %4 : vector<16x128xf32>
    %17 = arith.mulf %11, %16 : vector<16x128xf32>
    %18 = arith.addf %14, %17 : vector<16x128xf32>
    %cst_8 = arith.constant 2.500000e-01 : f32
    %19 = vector.broadcast %cst_8 : f32 to vector<16x128xf32>
    %20 = arith.mulf %19, %4 : vector<16x128xf32>
    %cst_9 = arith.constant 1.000000e+00 : f32
    %21 = vector.broadcast %cst_9 : f32 to vector<16x128xf32>
    %22 = arith.subf %21, %4 : vector<16x128xf32>
    %cst_10 = arith.constant 7.500000e-01 : f32
    %23 = vector.broadcast %cst_10 : f32 to vector<16x128xf32>
    %24 = arith.mulf %23, %22 : vector<16x128xf32>
    %25 = arith.addf %20, %24 : vector<16x128xf32>
    %26 = arith.mulf %18, %18 : vector<16x128xf32>
    %27 = arith.mulf %26, %25 : vector<16x128xf32>
    %cst_11 = arith.constant 0.000000e+00 : f32
    %28 = vector.broadcast %cst_11 : f32 to vector<16x128xf32>
    %29 = arith.maximumf %3, %28 : vector<16x128xf32>
    %30 = arith.mulf %3, %4 : vector<16x128xf32>
    %31 = arith.subf %29, %30 : vector<16x128xf32>
    %32 = math.absf %3 : vector<16x128xf32>
    %cst_12 = arith.constant 0.000000e+00 : f32
    %33 = vector.broadcast %cst_12 : f32 to vector<16x128xf32>
    %34 = arith.subf %33, %32 : vector<16x128xf32>
    %35 = math.exp %34 : vector<16x128xf32>
    %36 = math.log1p %35 : vector<16x128xf32>
    %37 = arith.addf %31, %36 : vector<16x128xf32>
    %38 = arith.mulf %37, %27 : vector<16x128xf32>
    %c0_13 = arith.constant 0 : index
    %c0_14 = arith.constant 0 : index
    %39 = vector.load %arg3[%c0_13, %c0_14] : memref<8x128xf32, #tpu.memory_space<vmem>>, vector<8x128xf32>
    %40 = vector.shape_cast %38 : vector<16x128xf32> to vector<2x8x128xf32>
    %cst_15 = arith.constant dense<0.000000e+00> : vector<8x128xf32>
    %41 = vector.multi_reduction <add>, %40, %cst_15 [0] : vector<2x8x128xf32> to vector<8x128xf32>
    %42 = arith.addf %39, %41 : vector<8x128xf32>
    %c0_16 = arith.constant 0 : index
    %c0_17 = arith.constant 0 : index
    %43 = vector.load %arg3[%c0_16, %c0_17] : memref<8x128xf32, #tpu.memory_space<vmem>>, vector<8x128xf32>
    tpu.vector_store %arg3[%c0_16, %c0_17], %42 {strides = array<i32>} : memref<8x128xf32, #tpu.memory_space<vmem>>, vector<8x128xf32>,
    return
  }
  func.func @transform_0(%arg0: i32) -> (i32, i32) {
    %c0_i32 = arith.constant 0 : i32
    %c0_i32_0 = arith.constant 0 : i32
    return %arg0, %c0_i32 : i32, i32
  }
  func.func @transform_1(%arg0: i32) -> (i32, i32) {
    %c0_i32 = arith.constant 0 : i32
    %c0_i32_0 = arith.constant 0 : i32
    return %arg0, %c0_i32 : i32, i32
  }
  func.func @transform_2(%arg0: i32) -> (i32, i32) {
    %c0_i32 = arith.constant 0 : i32
    %c0_i32_0 = arith.constant 0 : i32
    %c0_i32_1 = arith.constant 0 : i32
    return %c0_i32, %c0_i32_0 : i32, i32
  }
}

</mosaic_0001>

<bundles_post_ra>
// kernel: tpu_custom_call.1
= control target key start
LH: loop header
LB: loop body
LE: loop exit
PB: predicated region body
PF: predicated region fallthrough
CT: control target
= control target key end

     0   :  { %7 = vsyncpa [#allocation3], 0  ;;  %s279_s0 = inlined_call_operand.hbm [shape: f32[16,128], index: 0, kind: input, shape index: {}]   ;;  %s280_s1 = inlined_call_operand.hbm [shape: f32[16,128], index: 1, kind: input, shape index: {}]   ;;  %s281_s2 = inlined_call_operand.hbm [shape: f32[8,128], index: 2, kind: output, shape index: {}]  }
   0x1   :  { %8 = vsyncpa [#allocation6], 0 }
   0x2   :  { %9 = vsyncpa [#allocation4], 0  ;;  %s223_s9 = smov [#allocation2]   ;;  %s151_s13 = scalar_lea.hbm %s279_s0, 256 }
   0x3   :  { %s15_s10 = sshll.u32 %s223_s9, 4  ;;  %p152_p0 = scmp.ne.s32.totalorder %s279_s0, %s151_s13  ;;  %s16_s10 = int_to_ptr.vmem [resolvable:$true] %s15_s10 }
   0x4   :  { %p155_p1 = scmp.lt.u32.totalorder %s151_s13, %s279_s0 }
   0x6   :  { %p157_p2 = pnand %p155_p1, %p152_p0 }
   0x8   :  { %160 = shalt.err (!%p157_p2)
}
   0x9   :  { %s161_s18 = scalar_lea.vmem %s16_s10, 256  ;;  %p166_p4 = scmp.lt.s32.totalorder %s16_s10, %s16_s10 }
   0xa   :  { %p162_p3 = scmp.ne.s32.totalorder %s16_s10, %s161_s18  ;;  %p167_p5 = scmp.lt.s32.totalorder %s161_s18, %s161_s18 }
   0xc   :  { %p168_p6 = por %p167_p5, %p166_p4 }
   0xe   :  { %p169_p7 = pnand %p168_p6, %p162_p3 }
  0x10   :  { %172 = shalt.err (!%p169_p7)
}
  0x11   :  { %s224_s19 = smov 128   ;;  %s225_s20 = smov 8  }
  0x12   :  { %21 = dma.hbm_to_vmem [thread:$0]  %s279_s0, 256, %s16_s10, [#allocation3], %s224_s19, %s224_s19, %s225_s20  }
  0x13   :  { %s226_s23 = smov [#allocation5]   ;;  %s173_s27 = scalar_lea.hbm %s280_s1, 256 }
  0x14   :  { %s27_s24 = sshll.u32 %s226_s23, 4  ;;  %p174_p8 = scmp.ne.s32.totalorder %s280_s1, %s173_s27  ;;  %s28_s24 = int_to_ptr.vmem [resolvable:$true] %s27_s24 }
  0x15   :  { %p177_p9 = scmp.lt.u32.totalorder %s173_s27, %s280_s1 }
  0x17   :  { %p179_p10 = pnand %p177_p9, %p174_p8 }
  0x19   :  { %182 = shalt.err (!%p179_p10)
}
  0x1a   :  { %s183_s4 = scalar_lea.vmem %s28_s24, 256  ;;  %p188_p12 = scmp.lt.s32.totalorder %s28_s24, %s28_s24 }
  0x1b   :  { %p184_p11 = scmp.ne.s32.totalorder %s28_s24, %s183_s4  ;;  %p189_p13 = scmp.lt.s32.totalorder %s183_s4, %s183_s4 }
  0x1d   :  { %p190_p0 = por %p189_p13, %p188_p12 }
  0x1f   :  { %p191_p1 = pnand %p190_p0, %p184_p11 }
  0x21   :  { %194 = shalt.err (!%p191_p1)
}
  0x22   :  { %33 = dma.hbm_to_vmem [thread:$0]  %s280_s1, 256, %s28_s24, [#allocation6], %s224_s19, %s224_s19, %s225_s20  }
  0x23   :  { %217 = dma.done.wait [#allocation3], 256  }
  0x24   :  { %218 = vsyncadd [#allocation3], 4294967040 }
  0x25   :  { %219 = dma.done.wait [#allocation6], 256  }
  0x26   :  { %220 = vsyncadd [#allocation6], 4294967040  ;;  %v45_v0 = vld [vmem:[#allocation2] sm:$0xff]  ;;  %v46_v1 = vld [vmem:[#allocation2 + $0x8] sm:$0xff]  ;;  %s227_s1 = smov [#allocation7]  }
  0x27   :  { %v49_v2 = vmul.f32 0.5, %v45_v0  ;;  %v50_v3 = vmul.f32 0.5, %v46_v1  ;;  %v83_v4 = vand.u32 2147483647, %v45_v0  ;;  %v84_v5 = vand.u32 2147483647, %v46_v1 }
  0x28   :  { %v47_v14 = vld [vmem:[#allocation5] sm:$0xff]  ;;  %v48_v16 = vld [vmem:[#allocation5 + $0x8] sm:$0xff]  ;;  %v77_v39 = vmax.f32 %v45_v0, 0.0  ;;  %v78_v43 = vmax.f32 %v46_v1, 0.0  ;;  %s123_s6 = sshll.u32 %s227_s1, 4  ;;  %s124_s6 = int_to_ptr.vmem [resolvable:$true] %s123_s6 }
  0x29   :  { %139 = vtanh.f32 %v49_v2  ;;  %v85_v6 = vsub.f32 0.0, %v83_v4  ;;  %v86_v7 = vsub.f32 0.0, %v84_v5  ;;  %v61_v19 = vsub.f32 1.0, %v47_v14  ;;  %s195_s7 = scalar_lea.vmem %s124_s6, 128  ;;  %p200_p3 = scmp.lt.s32.totalorder %s124_s6, %s124_s6 }
  0x2a   :  { %141 = vtanh.f32 %v50_v3  ;;  %v62_v22 = vsub.f32 1.0, %v48_v16  ;;  %v67_v33 = vmul.f32 0.25, %v47_v14  ;;  %v68_v36 = vmul.f32 0.25, %v48_v16  ;;  %p196_p2 = scmp.ne.s32.totalorder %s124_s6, %s195_s7  ;;  %p201_p4 = scmp.lt.s32.totalorder %s195_s7, %s195_s7 }
  0x2b   :  { %v87_v8 = vmul.f32 1.442695, %v85_v6  ;;  %v89_v9 = vmul.f32 1.442695, %v86_v7  ;;  %v69_v34 = vmul.f32 0.75, %v61_v19  ;;  %v79_v40 = vmul.f32 %v47_v14, %v45_v0 }
  0x2c   :  { %v70_v37 = vmul.f32 0.75, %v62_v22  ;;  %v80_v44 = vmul.f32 %v48_v16, %v46_v1  ;;  %p202_p5 = por %p201_p4, %p200_p3 }
  0x2d   :  { %143 = vpow2.f32 %v87_v8  ;;  %v71_v46 = vadd.f32 %v69_v34, %v67_v33  ;;  %v81_v52 = vsub.f32 %v77_v39, %v79_v40 }
  0x2e   :  { %145 = vpow2.f32 %v89_v9  ;;  %v72_v48 = vadd.f32 %v70_v37, %v68_v36  ;;  %v82_v55 = vsub.f32 %v78_v43, %v80_v44  ;;  %p203_p6 = pnand %p202_p5, %p196_p2 }
  0x33   :  { %v140_v10 = vpop.eup %139 }
  0x34   :  { %v142_v11 = vpop.eup %141  ;;  %v53_v12 = vmul.f32 0.5, %v140_v10 }
  0x35   :  { %v54_v13 = vmul.f32 0.5, %v142_v11 }
  0x36   :  { %v55_v15 = vadd.f32 0.5, %v53_v12 }
  0x37   :  { %v56_v17 = vadd.f32 0.5, %v54_v13  ;;  %v144_v20 = vpop.eup %143 }
  0x38   :  { %v57_v18 = vsub.f32 1.0, %v55_v15  ;;  %v146_v23 = vpop.eup %145  ;;  %v91_v24 = vadd.f32 1.0, %v144_v20  ;;  %v63_v27 = vmul.f32 %v61_v19, %v55_v15  ;;  %v94_v30 = vmul.f32 -0.5, %v144_v20 }
  0x39   :  { %v58_v21 = vsub.f32 1.0, %v56_v17  ;;  %v100_v25 = vadd.f32 1.0, %v146_v23  ;;  %v64_v29 = vmul.f32 %v62_v22, %v56_v17  ;;  %v103_v31 = vmul.f32 -0.5, %v146_v23 }
  0x3a   :  { %v59_v26 = vmul.f32 %v57_v18, %v47_v14  ;;  %147 = vlog2.f32 %v91_v24  ;;  %v95_v38 = vadd.f32 1.0, %v94_v30  ;;  %v97_v41 = vand.u32 2147483647, %v144_v20 }
  0x3b   :  { %v60_v28 = vmul.f32 %v58_v21, %v48_v16  ;;  %149 = vlog2.f32 %v100_v25  ;;  %v104_v42 = vadd.f32 1.0, %v103_v31  ;;  %v106_v45 = vand.u32 2147483647, %v146_v23 }
  0x3c   :  { %v65_v32 = vadd.f32 %v63_v27, %v59_v26  ;;  %v96_v50 = vmul.f32 %v144_v20, %v95_v38  ;;  %vm98_vm0 = vcmp.lt.f32.partialorder %v97_v41, 0.0004427343 }
  0x3d   :  { %v66_v35 = vadd.f32 %v64_v29, %v60_v28  ;;  %v105_v53 = vmul.f32 %v146_v23, %v104_v42  ;;  %vm107_vm1 = vcmp.lt.f32.partialorder %v106_v45, 0.0004427343 }
  0x3e   :  { %v73_v47 = vmul.f32 %v65_v32, %v65_v32 }
  0x3f   :  { %v74_v49 = vmul.f32 %v66_v35, %v66_v35 }
  0x40   :  { %v75_v57 = vmul.f32 %v73_v47, %v71_v46 }
  0x41   :  { %v76_v59 = vmul.f32 %v74_v49, %v72_v48 }
  0x44   :  { %v148_v51 = vpop.eup %147 }
  0x45   :  { %v150_v54 = vpop.eup %149  ;;  %v93_v56 = vmul.f32 0.6931472, %v148_v51 }
  0x46   :  { %v102_v58 = vmul.f32 0.6931472, %v150_v54 }
  0x47   :  { %v99_v60 = vsel %vm98_vm0, %v96_v50, %v93_v56 }
  0x48   :  { %v108_v61 = vsel %vm107_vm1, %v105_v53, %v102_v58  ;;  %v109_v62 = vadd.f32 %v99_v60, %v81_v52 }
  0x49   :  { %v110_v63 = vadd.f32 %v108_v61, %v82_v55 }
  0x4a   :  { %v111_v0 = vmul.f32 %v109_v62, %v75_v57 }
  0x4b   :  { %v112_v1 = vmul.f32 %v110_v63, %v76_v59 }
  0x4d   :  { %v114_v2 = vadd.f32 %v112_v1, %v111_v0 }
  0x4f   :  { %116 = vst [vmem:[#allocation7] sm:$0xff] %v114_v2 }
  0x50   :  { %206 = shalt.err (!%p203_p6)
}
  0x51   :  { %s207_s10 = scalar_lea.hbm %s281_s2, 128 }
  0x52   :  { %p208_p7 = scmp.ne.s32.totalorder %s281_s2, %s207_s10  ;;  %p211_p8 = scmp.lt.u32.totalorder %s207_s10, %s281_s2 }
  0x54   :  { %p213_p9 = pnand %p211_p8, %p208_p7 }
  0x56   :  { %216 = shalt.err (!%p213_p9)
}
  0x57   :  { %126 = dma.vmem_to_hbm [thread:$0]  %s124_s6, 128, %s281_s2, [#allocation4]  }
  0x58   :  { %221 = dma.done.wait [#allocation4], 128  }
  0x59   :  { %222 = vsyncadd [#allocation4], 4294967168 }
  0x5a   :  { %130 = vsyncpa [#allocation3], 1 }
  0x5b   :  { %131 = vsyncpa [#allocation6], 1 }
  0x5c   :  { %132 = vsyncpa [#allocation4], 1 }

</bundles_post_ra>
